<compile_context>
chip_gen: v5e
topology: v5e:2x2
jax: 0.10.0
libtpu: 0.0.40
codegen_flags: <defaults>
</compile_context>

<pallas_src>
import math
from functools import partial

import jax
import jax.numpy as jnp
from jax.experimental import pallas as pl
from jax.experimental.pallas import tpu as pltpu


def _sinusoidal_kernel(time_ref, sel_ref, freqs_ref, phase_ref, out_ref, *,
                       use_mxu: bool):
    # time_ref : (TB, k_lhs)   f32  -- k folded batch timesteps per row (zero-padded cols)
    # sel_ref  : (k_lhs, D)    f32  -- constant 0/1 chunk-selection matrix (resident)
    # freqs_ref: (1, D)        f32  -- tiled [freq | freq] table (resident)
    # phase_ref: (1, D)        f32  -- tiled [0 | pi/2] table (resident)
    # out_ref  : (TB, D)       f32  -- D is a multiple of 128 (lane dense)
    if use_mxu:
        # Expand each timestep into its dim-wide chunk on the (idle) MXU.
        # sel is exactly 0/1, so with HIGHEST precision the expansion is exact.
        t_exp = jax.lax.dot_general(
            time_ref[...], sel_ref[...],
            dimension_numbers=(((1,), (0,)), ((), ())),
            precision=jax.lax.Precision.HIGHEST,
            preferred_element_type=jnp.float32,
        )
    else:
        # k == 1: (TB, 1) lane-broadcasts naturally in the multiply below.
        t_exp = time_ref[...]
    # Single full-width VPU pass and a single unmasked full-width store.
    out_ref[...] = jnp.sin(t_exp * freqs_ref[...] + phase_ref[...])


def sinusoidal_position_embeddings(time: jax.Array, dim: int) -> jax.Array:
    """time: (B,) array of timesteps; returns (B, dim) float32 embeddings."""
    assert dim % 2 == 0, "dim must be even"
    assert dim >= 4, "dim must be >= 4 (half_dim - 1 would be 0 otherwise)"
    half_dim = dim // 2
    b = int(time.shape[0])

    # Lane-fold factor: pack k batch rows per kernel row so the stored last dim
    # is a full multiple of 128 lanes whenever dim divides 128.
    k = (128 // dim) if (dim < 128 and 128 % dim == 0) else 1
    use_mxu = k > 1
    k_lhs = ((k + 7) // 8) * 8 if use_mxu else 1      # sublane-aligned matmul K

    # Row count padded to a multiple of 8 (f32 sublane); padded rows/lanes are
    # throwaway compute that is sliced off after the call.
    r_raw = (b + k - 1) // k
    r = max(8, ((r_raw + 7) // 8) * 8)
    b_pad = r * k
    d_pad = ((k * dim + 127) // 128) * 128            # lane-dense row width

    # ---- wrapper-side constant tables -------------------------------------
    t32 = time.astype(jnp.float32).reshape(-1)
    if b_pad != b:
        t32 = jnp.concatenate([t32, jnp.zeros((b_pad - b,), jnp.float32)])
    time_2d = t32.reshape(r, k)
    if k_lhs != k:
        time_2d = jnp.concatenate(
            [time_2d, jnp.zeros((r, k_lhs - k), jnp.float32)], axis=1)

    log_scale = math.log(10000.0) / (half_dim - 1)
    base = jnp.exp(jnp.arange(half_dim, dtype=jnp.float32) * -log_scale)
    freqs_row = jnp.concatenate([base, base])                             # (dim,)
    phase_row = jnp.concatenate(
        [jnp.zeros((half_dim,), jnp.float32),
         jnp.full((half_dim,), math.pi / 2, dtype=jnp.float32)])          # (dim,)
    lane_pad = d_pad - k * dim
    freqs = jnp.concatenate(
        [jnp.tile(freqs_row, k), jnp.zeros((lane_pad,), jnp.float32)]
    ).reshape(1, d_pad)
    phase = jnp.concatenate(
        [jnp.tile(phase_row, k), jnp.zeros((lane_pad,), jnp.float32)]
    ).reshape(1, d_pad)
    # 0/1 selection matrix: fold slot j -> output columns [j*dim, (j+1)*dim).
    col_chunk = jnp.arange(d_pad, dtype=jnp.int32) // dim
    sel = (col_chunk[None, :] ==
           jnp.arange(k_lhs, dtype=jnp.int32)[:, None]).astype(jnp.float32)

    # ---- tiling ------------------------------------------------------------
    row_bytes = d_pad * 4
    tb = max(8, ((4 << 20) // row_bytes) // 8 * 8)    # ~4 MiB output tiles
    if r >= 16:
        # keep >= 2 grid steps so v7x's two TensorCores both get batch work
        tb = min(tb, max(8, (r // 2) // 8 * 8))
    tb = min(tb, r)
    grid = (pl.cdiv(r, tb),)

    cost = pl.CostEstimate(
        flops=2 * r * k_lhs * d_pad + 2 * r * d_pad,
        transcendentals=r * d_pad,
        bytes_accessed=4 * (r * k_lhs + k_lhs * d_pad + 2 * d_pad + r * d_pad),
    )

    out = pl.pallas_call(
        partial(_sinusoidal_kernel, use_mxu=use_mxu),
        out_shape=jax.ShapeDtypeStruct((r, d_pad), jnp.float32),
        grid=grid,
        in_specs=[
            pl.BlockSpec((tb, k_lhs), lambda i: (i, 0)),      # timesteps (tiled)
            pl.BlockSpec((k_lhs, d_pad), lambda i: (0, 0)),   # resident selection
            pl.BlockSpec((1, d_pad), lambda i: (0, 0)),       # resident freqs
            pl.BlockSpec((1, d_pad), lambda i: (0, 0)),       # resident phase
        ],
        out_specs=pl.BlockSpec((tb, d_pad), lambda i: (i, 0)),
        compiler_params=pltpu.CompilerParams(
            dimension_semantics=("parallel",),
            vmem_limit_bytes=32 * 1024 * 1024,
        ),
        cost_estimate=cost,
    )(time_2d, sel, freqs, phase)

    # Undo wrapper-side padding / lane fold.
    if k > 1:
        # here d_pad == k*dim == 128, so (r, k*dim) row-major == (r*k, dim)
        return out.reshape(r * k, dim)[:b]
    return out[:b, :dim]


def _reference(time, dim):
    half_dim = dim // 2
    scale = math.log(10000.0) / (half_dim - 1)
    freqs = jnp.exp(jnp.arange(half_dim, dtype=jnp.float32) * -scale)
    emb = time.astype(jnp.float32)[:, None] * freqs[None, :]
    return jnp.concatenate([jnp.sin(emb), jnp.cos(emb)], axis=-1)


if __name__ == "__main__":
    key = jax.random.PRNGKey(0)
    batch = 8
    dim = 32
    # deterministic "timesteps" in [0, 1000), like diffusion step indices
    time = jax.random.uniform(key, (batch,), dtype=jnp.float32) * 1000.0

    out = sinusoidal_position_embeddings(time, dim)
    out = jax.block_until_ready(out)

    ref = _reference(time, dim)
    assert out.shape == (batch, dim), out.shape
    # cos(x) is computed as sin(x + pi/2); for |x| up to ~1e3 the f32 rounding
    # of (x + pi/2) bounds the difference vs a direct cos at ~4e-5, well inside
    # the intrinsic f32 uncertainty of the reference itself.
    assert jnp.allclose(out, ref, atol=1e-4, rtol=1e-4), "mismatch vs reference"

    print("KERNEL_OK")
</pallas_src>

<mosaic_0001>
module attributes {stable_mosaic.version = 11 : i64} {
  func.func @_sinusoidal_kernel(%arg0: i32, %arg1: memref<8x8xf32, #tpu.memory_space<vmem>>, %arg2: memref<8x128xf32, #tpu.memory_space<vmem>>, %arg3: memref<1x128xf32, #tpu.memory_space<vmem>>, %arg4: memref<1x128xf32, #tpu.memory_space<vmem>>, %arg5: memref<8x128xf32, #tpu.memory_space<vmem>>) attributes {dimension_semantics = [#tpu.dimension_semantics<parallel>], iteration_bounds = array<i64: 1>, scalar_prefetch = 0 : i64, scratch_operands = 0 : i64, tpu.core_type = #tpu.core_type<tc>, window_params = [{transform_indices = @transform_0, window_bounds = array<i64: 8, 8>}, {pipeline_mode = #tpu.pipeline_mode<synchronous>, transform_indices = @transform_1, window_bounds = array<i64: 8, 128>}, {pipeline_mode = #tpu.pipeline_mode<synchronous>, transform_indices = @transform_2, window_bounds = array<i64: 1, 128>}, {pipeline_mode = #tpu.pipeline_mode<synchronous>, transform_indices = @transform_3, window_bounds = array<i64: 1, 128>}, {transform_indices = @transform_4, window_bounds = array<i64: 8, 128>}]} {
    %c0 = arith.constant 0 : index
    %c0_0 = arith.constant 0 : index
    %0 = vector.load %arg1[%c0, %c0_0] : memref<8x8xf32, #tpu.memory_space<vmem>>, vector<8x8xf32>
    %c0_1 = arith.constant 0 : index
    %c0_2 = arith.constant 0 : index
    %1 = vector.load %arg2[%c0_1, %c0_2] : memref<8x128xf32, #tpu.memory_space<vmem>>, vector<8x128xf32>
    %cst = arith.constant dense<0.000000e+00> : vector<8x128xf32>
    %2 = tpu.matmul %0, %1, %cst {dimension_numbers = #tpu.dot_dimension_numbers<[1], [0], [0], [1], [0, 0, 1, 1], [], []>, precision = #tpu.contract_precision<fp32>} : vector<8x8xf32>, vector<8x128xf32>, vector<8x128xf32> -> vector<8x128xf32>
    %c0_3 = arith.constant 0 : index
    %c0_4 = arith.constant 0 : index
    %3 = vector.load %arg3[%c0_3, %c0_4] : memref<1x128xf32, #tpu.memory_space<vmem>>, vector<1x128xf32>
    %4 = vector.broadcast %3 : vector<1x128xf32> to vector<8x128xf32>
    %5 = arith.mulf %2, %4 : vector<8x128xf32>
    %c0_5 = arith.constant 0 : index
    %c0_6 = arith.constant 0 : index
    %6 = vector.load %arg4[%c0_5, %c0_6] : memref<1x128xf32, #tpu.memory_space<vmem>>, vector<1x128xf32>
    %7 = vector.broadcast %6 : vector<1x128xf32> to vector<8x128xf32>
    %8 = arith.addf %5, %7 : vector<8x128xf32>
    %9 = math.sin %8 : vector<8x128xf32>
    %c0_7 = arith.constant 0 : index
    %c0_8 = arith.constant 0 : index
    %10 = vector.load %arg5[%c0_7, %c0_8] : memref<8x128xf32, #tpu.memory_space<vmem>>, vector<8x128xf32>
    tpu.vector_store %arg5[%c0_7, %c0_8], %9 {strides = array<i32>} : memref<8x128xf32, #tpu.memory_space<vmem>>, vector<8x128xf32>,
    return
  }
  func.func @transform_0(%arg0: i32) -> (i32, i32) {
    %c0_i32 = arith.constant 0 : i32
    %c0_i32_0 = arith.constant 0 : i32
    return %arg0, %c0_i32 : i32, i32
  }
  func.func @transform_1(%arg0: i32) -> (i32, i32) {
    %c0_i32 = arith.constant 0 : i32
    %c0_i32_0 = arith.constant 0 : i32
    %c0_i32_1 = arith.constant 0 : i32
    return %c0_i32, %c0_i32_0 : i32, i32
  }
  func.func @transform_2(%arg0: i32) -> (i32, i32) {
    %c0_i32 = arith.constant 0 : i32
    %c0_i32_0 = arith.constant 0 : i32
    %c0_i32_1 = arith.constant 0 : i32
    return %c0_i32, %c0_i32_0 : i32, i32
  }
  func.func @transform_3(%arg0: i32) -> (i32, i32) {
    %c0_i32 = arith.constant 0 : i32
    %c0_i32_0 = arith.constant 0 : i32
    %c0_i32_1 = arith.constant 0 : i32
    return %c0_i32, %c0_i32_0 : i32, i32
  }
  func.func @transform_4(%arg0: i32) -> (i32, i32) {
    %c0_i32 = arith.constant 0 : i32
    %c0_i32_0 = arith.constant 0 : i32
    return %arg0, %c0_i32 : i32, i32
  }
}

</mosaic_0001>

<bundles_post_ra>
// kernel: tpu_custom_call.1
= control target key start
LH: loop header
LB: loop body
LE: loop exit
PB: predicated region body
PF: predicated region fallthrough
CT: control target
= control target key end

     0   :  { %9 = vsyncpa [#allocation3], 0  ;;  %s579_s0 = inlined_call_operand.hbm [shape: f32[8,8], index: 0, kind: input, shape index: {}]   ;;  %s580_s1 = inlined_call_operand.hbm [shape: f32[8,128], index: 1, kind: input, shape index: {}]   ;;  %s581_s2 = inlined_call_operand.vmem [shape: f32[1,128], index: 2, kind: input, shape index: {}]   ;;  %s582_s3 = inlined_call_operand.vmem [shape: f32[1,128], index: 3, kind: input, shape index: {}]   ;;  %s583_s4 = inlined_call_operand.hbm [shape: f32[8,128], index: 4, kind: output, shape index: {}]  }
   0x1   :  { %10 = vsyncpa [#allocation6], 0 }
   0x2   :  { %11 = vsyncpa [#allocation4], 0  ;;  %s17_s17 = sshll.u32 %s579_s0, 4  ;;  %s475_s18 = smov [#allocation2]   ;;  %s18_s17 = int_to_ptr.hbm [resolvable:$true] %s17_s17 }
   0x3   :  { %s19_s19 = sshll.u32 %s475_s18, 4  ;;  %s28_s22 = sshll.u32 %s580_s1, 4  ;;  %s20_s19 = int_to_ptr.vmem [resolvable:$true] %s19_s19  ;;  %s29_s22 = int_to_ptr.hbm [resolvable:$true] %s28_s22 }
   0x4   :  { %22 = dma.hbm_to_vmem [thread:$0]  %s18_s17, 128, %s20_s19, [#allocation3]  }
   0x5   :  { %s476_s23 = smov [#allocation5]  }
   0x6   :  { %s30_s24 = sshll.u32 %s476_s23, 4  ;;  %s31_s24 = int_to_ptr.vmem [resolvable:$true] %s30_s24 }
   0x7   :  { %33 = dma.hbm_to_vmem [thread:$0]  %s29_s22, 128, %s31_s24, [#allocation6]  }
   0x8   :  { %469 = dma.done.wait [#allocation3], 128  }
   0x9   :  { %470 = vsyncadd [#allocation3], 4294967168 }
   0xa   :  { %471 = dma.done.wait [#allocation6], 128  }
   0xb   :  { %472 = vsyncadd [#allocation6], 4294967168  ;;  %vm48_vm0 = vcmask 64512   ;;  %v47_v0 = vld [vmem:[#allocation5] sm:$0xff]  ;;  %v46_v1 = vld [vmem:[#allocation2] sm:$0xff]  ;;  %s371_s29 = sshll.u32 %s583_s4, 4  ;;  %s372_s29 = int_to_ptr.hbm [resolvable:$true] %s371_s29 }
   0xc   :  { %v67_v2 = vand.u32 4294901760, %v47_v0  ;;  %v50_v3 = vsel %vm48_vm0, %v46_v1, 0  ;;  %v395_v23 = vld [vmem:[%s581_s2] ss:$0 sm:$0xff]  ;;  %v477_v39 = vmov 2102212464  }
   0xd   :  { %v69_v4 = vand.u32 4294901760, %v50_v3  ;;  %v396_v25 = vld [vmem:[%s582_s3] ss:$0 sm:$0xff]  ;;  %v478_v41 = vmov 920167782   ;;  %s484_s2 = smov [#allocation7]  }
   0xe   :  { %v94_v5 = vsub.f32 %v47_v0, %v67_v2  ;;  %144 = vmatpush.msra.mxu3 %v67_v2  ;;  %68 = vmatpush.msra.mxu0 %v67_v2  ;;  %v479_v44 = vmov 1326507024   ;;  %v480_v46 = vmov 683565275   ;;  %v481_v48 = vmov 2475754826  }
   0xf   :  { %v70_v6 = vsub.f32 %v50_v3, %v69_v4  ;;  %v482_v51 = vmov 2131351028   ;;  %s369_s3 = sshll.u32 %s484_s2, 4  ;;  %s370_s3 = int_to_ptr.vmem [resolvable:$true] %s369_s3 }
  0x10   :  { %121 = vmatpush.msra.mxu2 %v94_v5  ;;  %v95_v7 = vand.u32 4294901760, %v94_v5 }
  0x11   :  { %124 = vmatmul.f32.vlgmr.msra.gmra.mxu2 %v70_v6  ;;  %v71_v8 = vand.u32 4294901760, %v70_v6 }
  0x12   :  { %v96_v9 = vsub.f32 %v94_v5, %v95_v7  ;;  %170 = vmatpush.msrb.mxu0 %v95_v7 }
  0x13   :  { %148 = vmatmul.f32.vlgmr.msra.gmra.mxu3 %v71_v8  ;;  %v72_v10 = vsub.f32 %v70_v6, %v71_v8 }
  0x14   :  { %v97_v11 = vand.u32 4294901760, %v96_v9 }
  0x15   :  { %v73_v12 = vand.u32 4294901760, %v72_v10 }
  0x16   :  { %98 = vmatpush.msra.mxu1 %v97_v11 }
  0x17   :  { %74 = vmatmul.f32.vlgmr.msra.gmra.mxu0 %v73_v12  ;;  %100 = vmatmul.f32.vlgmr.msra.gmra.mxu1 %v69_v4 }
  0x18   :  { %192 = vmatpush.msrb.mxu1 %v67_v2 }
  0x1f   :  { %172 = vmatmul.f32.vlgmr.msrb.gmra.mxu0 %v69_v4  ;;  %194 = vmatmul.f32.vlgmr.msrb.gmra.mxu1 %v69_v4 }
  0x94   :  { %v75_v13 = vpop.f32.mrf.mxu0  ;;  %v101_v14 = vpop.f32.mrf.mxu1 }
  0x95   :  { %v102_v15 = vadd.f32 %v101_v14, %v75_v13  ;;  %v125_v16 = vpop.f32.mrf.mxu2 }
  0x96   :  { %v149_v18 = vpop.f32.mrf.mxu3 }
  0x97   :  { %v126_v17 = vadd.f32 %v125_v16, %v102_v15 }
  0x99   :  { %v150_v19 = vadd.f32 %v149_v18, %v126_v17 }
  0x9c   :  { %v173_v20 = vpop.f32.mrf.mxu0  ;;  %v195_v21 = vpop.f32.mrf.mxu1 }
  0x9d   :  { %v174_v22 = vadd.f32 %v173_v20, %v150_v19 }
  0x9f   :  { %v196_v24 = vadd.f32 %v195_v21, %v174_v22 }
  0xa1   :  { %v202_v26 = vmul.f32 %v395_v23, %v196_v24 }
  0xa3   :  { %v522_v27 = vadd.f32 %v396_v25, %v202_v26  ;;  %v483_v25 = vmov 0  }
  0xa5   :  { %v211_v28 = vand.u32 2139095040, %v522_v27  ;;  %v208_v31 = vand.u32 2147483647, %v522_v27  ;;  %vm210_vm13 = vcmp.lt.s32.totalorder %v522_v27, 0 }
  0xa7   :  { %v212_v29 = vshrl.u32 %v211_v28, 23  ;;  %v215_v33 = vand.u32 8388607, %v208_v31  ;;  %vm209_vm14 = vcmp.le.f32.partialorder %v208_v31, 0.7853982 }
  0xa9   :  { %v382_v30 = vadd.s32 4294967169, %v212_v29  ;;  %v216_v37 = vor.u32 8388608, %v215_v33 }
  0xab   :  { %v218_v32 = vadd.s32 1, %v382_v30  ;;  %v537_v58 = vshll.u32 %v216_v37, 8 }
  0xad   :  { %vm219_vm1 = vcmp.gt.s32.totalorder %v218_v32, 0  ;;  %v257_v4 = vand.u32 65535, %v537_v58  ;;  %v258_v6 = vshrl.u32 %v537_v58, 16 }
  0xae   :  { %v220_v34 = vsel %vm219_vm1, %v218_v32, 0 }
  0xaf   :  { %v222_v35 = vand.u32 31, %v220_v34  ;;  %v530_v38 = vshrl.u32 %v220_v34, 5 }
  0xb1   :  { %v528_v36 = vsub.s32 32, %v222_v35  ;;  %v234_v40 = vshll.u32 %v477_v39, %v222_v35  ;;  %v237_v42 = vshll.u32 %v478_v41, %v222_v35  ;;  %v225_v47 = vshll.u32 %v480_v46, %v222_v35 }
  0xb2   :  { %v228_v50 = vshll.u32 %v481_v48, %v222_v35  ;;  %v231_v53 = vshll.u32 %v482_v51, %v222_v35  ;;  %vm243_vm2 = vcmp.lt.s32.totalorder %v530_v38, 4  ;;  %vm240_vm3 = vcmp.lt.s32.totalorder %v530_v38, 1 }
  0xb3   :  { %v235_v43 = vshrl.u32 %v478_v41, %v528_v36  ;;  %v238_v45 = vshrl.u32 %v479_v44, %v528_v36  ;;  %v226_v49 = vshrl.u32 %v481_v48, %v528_v36  ;;  %v229_v52 = vshrl.u32 %v482_v51, %v528_v36 }
  0xb4   :  { %v232_v54 = vshrl.u32 %v477_v39, %v528_v36  ;;  %vm242_vm4 = vcmp.lt.s32.totalorder %v530_v38, 3  ;;  %vm241_vm5 = vcmp.lt.s32.totalorder %v530_v38, 2  ;;  %v224_v32 = vshrl.u32 %v480_v46, %v528_v36 }
  0xb5   :  { %v236_v55 = vor.u32 %v235_v43, %v234_v40  ;;  %v239_v56 = vor.u32 %v238_v45, %v237_v42  ;;  %v227_v57 = vor.u32 %v226_v49, %v225_v47  ;;  %v230_v59 = vor.u32 %v229_v52, %v228_v50 }
  0xb6   :  { %v233_v60 = vor.u32 %v232_v54, %v231_v53 }
  0xb7   :  { %v249_v61 = vsel %vm243_vm2, %v236_v55, 920167782  ;;  %v253_v62 = vsel %vm243_vm2, %v239_v56, 1326507024  ;;  %v248_v63 = vsel %vm240_vm3, %v227_v57, %v230_v59  ;;  %v244_v40 = vsel %vm240_vm3, %v224_v32, %v227_v57 }
  0xb8   :  { %v250_v0 = vsel %vm242_vm4, %v233_v60, %v249_v61  ;;  %v252_v1 = vsel %vm240_vm3, %v230_v59, %v233_v60  ;;  %v254_v3 = vsel %vm242_vm4, %v236_v55, %v253_v62  ;;  %v245_v28 = vsel %vm243_vm2, %v233_v60, 2102212464 }
  0xb9   :  { %v251_v2 = vsel %vm241_vm5, %v248_v63, %v250_v0  ;;  %v255_v5 = vsel %vm241_vm5, %v252_v1, %v254_v3  ;;  %v246_v41 = vsel %vm242_vm4, %v230_v59, %v245_v28  ;;  %vm351_vm2 = vweird.f32 %v522_v27 }
  0xba   :  { %v281_v7 = vand.u32 65535, %v251_v2  ;;  %v282_v8 = vshrl.u32 %v251_v2, 16  ;;  %v259_v9 = vand.u32 65535, %v255_v5  ;;  %v260_v10 = vshrl.u32 %v255_v5, 16 }
  0xbb   :  { %v247_v36 = vsel %vm241_vm5, %v244_v40, %v246_v41 }
  0xbc   :  { %v284_v11 = vmul.u32 %v282_v8, %v257_v4  ;;  %v285_v12 = vmul.u32 %v281_v7, %v258_v6  ;;  %v262_v13 = vmul.u32 %v260_v10, %v257_v4  ;;  %v263_v14 = vmul.u32 %v259_v9, %v258_v6 }
  0xbd   :  { %v283_v15 = vmul.u32 %v281_v7, %v257_v4  ;;  %v261_v17 = vmul.u32 %v259_v9, %v257_v4  ;;  %v286_v19 = vmul.u32 %v282_v8, %v258_v6  ;;  %v264_v20 = vmul.u32 %v260_v10, %v258_v6 }
  0xbe   :  { %v287_v16 = vshll.u32 %v284_v11, 16  ;;  %v265_v18 = vshll.u32 %v262_v13, 16  ;;  %v289_v21 = vshll.u32 %v285_v12, 16  ;;  %v267_v23 = vshll.u32 %v263_v14, 16 }
  0xbf   :  { %v288_v37 = vshrl.u32 %v284_v11, 16  ;;  %v266_v42 = vshrl.u32 %v262_v13, 16  ;;  %v290_v44 = vshrl.u32 %v285_v12, 16  ;;  %v268_v47 = vshrl.u32 %v263_v14, 16 }
  0xc0   :  { %vm291_vm6 = vc.u32 %v283_v15, %v287_v16  ;;  %v293_v22 = vadd.s32 %v287_v16, %v283_v15  ;;  %vm269_vm7 = vc.u32 %v261_v17, %v265_v18  ;;  %v271_v24 = vadd.s32 %v265_v18, %v261_v17 }
  0xc1   :  { %v292_v26 = vsel %vm291_vm6, 1, %v483_v25  ;;  %v270_v29 = vsel %vm269_vm7, 1, %v483_v25  ;;  %v301_v52 = vmul.u32 %v537_v58, %v247_v36 }
  0xc2   :  { %v294_v30 = vadd.s32 %v292_v26, %v286_v19  ;;  %vm295_vm8 = vc.u32 %v293_v22, %v289_v21  ;;  %v272_v33 = vadd.s32 %v270_v29, %v264_v20  ;;  %vm273_vm9 = vc.u32 %v271_v24, %v267_v23 }
  0xc3   :  { %v296_v34 = vsel %vm295_vm8, 1, %v483_v25  ;;  %v274_v35 = vsel %vm273_vm9, 1, %v483_v25  ;;  %v297_v50 = vadd.s32 %v293_v22, %v289_v21 }
  0xc4   :  { %v298_v39 = vadd.s32 %v296_v34, %v294_v30  ;;  %v276_v43 = vadd.s32 %v274_v35, %v272_v33 }
  0xc6   :  { %v299_v45 = vadd.s32 %v298_v39, %v288_v37  ;;  %v277_v48 = vadd.s32 %v276_v43, %v266_v42 }
  0xc8   :  { %v300_v46 = vadd.s32 %v299_v45, %v290_v44  ;;  %v278_v49 = vadd.s32 %v277_v48, %v268_v47 }
  0xca   :  { %v304_v51 = vadd.s32 1, %v300_v46  ;;  %vm303_vm10 = vc.u32 %v278_v49, %v297_v50  ;;  %v302_v0 = vadd.s32 %v297_v50, %v278_v49 }
  0xcc   :  { %v305_v53 = vsel %vm303_vm10, %v304_v51, %v300_v46 }
  0xcd   :  { %v306_v54 = vadd.s32 %v305_v53, %v301_v52 }
  0xcf   :  { %v307_v55 = vadd.s32 536870912, %v306_v54 }
  0xd1   :  { %v308_v56 = vshrl.u32 %v307_v55, 30 }
  0xd3   :  { %v309_v57 = vshll.u32 %v308_v56, 30  ;;  %v332_v13 = vsub.s32 4, %v308_v56 }
  0xd5   :  { %v310_v59 = vsub.s32 %v306_v54, %v309_v57  ;;  %v333_v18 = vsel %vm210_vm13, %v332_v13, %v308_v56 }
  0xd6   :  { %v335_v21 = vsel %vm209_vm14, 0, %v333_v18 }
  0xd7   :  { %vm311_vm11 = vcmp.lt.s32.totalorder %v310_v59, 0  ;;  %v312_v60 = vsub.s32 0, %v310_v59  ;;  %v352_v26 = vadd.s32 3, %v335_v21 }
  0xd9   :  { %v313_v61 = vsel %vm311_vm11, %v312_v60, %v310_v59  ;;  %v353_v32 = vand.u32 3, %v352_v26 }
  0xda   :  { %v314_v62 = vclz %v313_v61 }
  0xdb   :  { %vm355_vm15 = vcmp.eq.s32.totalorder %v353_v32, 0  ;;  %vm358_vm0 = vcmp.eq.s32.totalorder %v353_v32, 2  ;;  %vm354_vm1 = vcmp.lt.s32.totalorder %v353_v32, 2 }
  0xdc   :  { %v383_v63 = vadd.s32 4294967294, %v314_v62 }
  0xde   :  { %vm384_vm12 = vcmp.lt.s32.totalorder %v383_v63, 0 }
  0xdf   :  { %v317_v38 = vsel %vm384_vm12, 0, %v383_v63 }
  0xe0   :  { %v318_v1 = vsub.s32 32, %v317_v38  ;;  %v322_v2 = vsub.s32 4294967266, %v317_v38  ;;  %v319_v3 = vshll.u32 %v310_v59, %v317_v38 }
  0xe2   :  { %v320_v4 = vshrl.u32 %v302_v0, %v318_v1  ;;  %v323_v58 = vadd.s32 127, %v322_v2 }
  0xe4   :  { %v321_v5 = vor.u32 %v320_v4, %v319_v3  ;;  %v324_v6 = vshll.u32 %v323_v58, 23 }
  0xe6   :  { %v325_v7 = vor.u32 4788187, %v324_v6  ;;  %v328_v9 = vcvt.s32.f32 %v321_v5 }
  0xe8   :  { %v326_v8 = vand.u32 2147483647, %v325_v7 }
  0xea   :  { %v329_v10 = vmul.f32 %v328_v9, %v326_v8 }
  0xec   :  { %v330_v11 = vxor.u32 2147483648, %v329_v10 }
  0xee   :  { %v331_v12 = vsel %vm210_vm13, %v330_v11, %v329_v10 }
  0xef   :  { %v334_v14 = vsel %vm209_vm14, %v522_v27, %v331_v12 }
  0xf0   :  { %v336_v15 = vmul.f32 %v334_v14, %v334_v14 }
  0xf2   :  { %v337_v16 = vmul.f32 -0.001358992, %v336_v15  ;;  %v344_v17 = vmul.f32 -0.00019511016, %v336_v15 }
  0xf4   :  { %v338_v19 = vadd.f32 0.041655596, %v337_v16  ;;  %v345_v20 = vadd.f32 0.008332121, %v344_v17 }
  0xf6   :  { %v339_v22 = vmul.f32 %v338_v19, %v336_v15  ;;  %v346_v23 = vmul.f32 %v345_v20, %v336_v15 }
  0xf8   :  { %v340_v24 = vadd.f32 -0.4999988, %v339_v22  ;;  %v347_v25 = vadd.f32 -0.16666654, %v346_v23 }
  0xfa   :  { %v341_v28 = vmul.f32 %v340_v24, %v336_v15  ;;  %v348_v29 = vmul.f32 %v347_v25, %v336_v15 }
  0xfc   :  { %v342_v30 = vadd.f32 1.0, %v341_v28  ;;  %v349_v31 = vadd.f32 1.0, %v348_v29 }
  0xfe   :  { %v350_v33 = vmul.f32 %v349_v31, %v334_v14  ;;  %v359_v34 = vxor.u32 2147483648, %v342_v30 }
 0x100   :  { %v356_v35 = vxor.u32 2147483648, %v350_v33  ;;  %v360_v39 = vsel %vm358_vm0, %v359_v34, %v350_v33 }
 0x102   :  { %v357_v37 = vsel %vm355_vm15, %v342_v30, %v356_v35 }
 0x103   :  { %v361_v40 = vsel %vm354_vm1, %v357_v37, %v360_v39 }
 0x104   :  { %v362_v41 = vsel %vm351_vm2, nan, %v361_v40 }
 0x105   :  { %363 = vst [vmem:[#allocation7] sm:$0xff] %v362_v41 }
 0x106   :  { %374 = dma.vmem_to_hbm [thread:$0]  %s370_s3, 128, %s372_s29, [#allocation4]  }
 0x107   :  { %473 = dma.done.wait [#allocation4], 128  }
 0x108   :  { %474 = vsyncadd [#allocation4], 4294967168 }
 0x109   :  { %379 = vsyncpa [#allocation3], 1 }
 0x10a   :  { %380 = vsyncpa [#allocation6], 1 }
 0x10b   :  { %381 = vsyncpa [#allocation4], 1 }

</bundles_post_ra>
